<compile_context>
chip_gen: v5e
topology: v5e:2x2
jax: 0.10.0
libtpu: 0.0.40
codegen_flags: <defaults>
</compile_context>

<pallas_src>
import jax
import jax.numpy as jnp
from jax.experimental import pallas as pl
from jax.experimental.pallas import tpu as pltpu


def _attention_kernel(mat_ref, q_ref, k_ref, v_ref, o_ref):
    """mat: [M, M] block-diagonal band mask; q/k/v/o: [M, D] flattened (M = B*T)."""
    a = jnp.maximum(k_ref[...], 0.0) * v_ref[...]                          # relu(k) * v     (VPU)
    attn = jnp.dot(mat_ref[...], a, preferred_element_type=jnp.float32)    # banded seq sum  (MXU)
    o_ref[...] = jnp.maximum(q_ref[...], 0.0) * attn                       # relu(q) * attn  (VPU)


def attention_forward(q, k, v, ctx):
    """q, k, v: [B, T, D] float32; ctx: python int (band half-width). Returns [B, T, D]."""
    B, T, D = q.shape
    M = B * T

    # Band mask |i-j| <= ctx  (== triu(ones,-ctx) * triu(ones,-ctx).T), lifted to a
    # block-diagonal [B*T, B*T] matrix so every batch shares one MXU matmul.
    # NOTE: for large B*T one would switch back to a per-batch grid (kept "parallel")
    # or ctx-wide shifted adds instead of a dense quadratic mask.
    ii = jnp.arange(T, dtype=jnp.int32)
    band = (jnp.abs(ii[:, None] - ii[None, :]) <= ctx).astype(jnp.float32)  # [T, T]
    mat = jnp.kron(jnp.eye(B, dtype=jnp.float32), band)                     # [M, M]

    qf = q.reshape(M, D)
    kf = k.reshape(M, D)
    vf = v.reshape(M, D)

    def full2d(shape):
        return pl.BlockSpec(shape, lambda i: (0, 0))   # whole (tiny) array resident in VMEM

    out = pl.pallas_call(
        _attention_kernel,
        out_shape=jax.ShapeDtypeStruct((M, D), jnp.float32),
        grid=(1,),
        in_specs=[full2d((M, M)), full2d((M, D)), full2d((M, D)), full2d((M, D))],
        out_specs=full2d((M, D)),
        compiler_params=pltpu.CompilerParams(dimension_semantics=("parallel",)),
    )(mat, qf, kf, vf)
    return out.reshape(B, T, D)


def reference(q, k, v, ctx):
    """Pure-JAX replica of the PyTorch attention.forward (dropp=0)."""
    T = q.shape[1]
    ii = jnp.arange(T)
    mat = (jnp.abs(ii[:, None] - ii[None, :]) <= ctx).astype(jnp.float32)
    attn = jnp.einsum('ij,bjk->bik', mat, jnp.maximum(k, 0.0) * v)
    return jnp.maximum(q, 0.0) * attn


if __name__ == "__main__":
    B, T, D = 2, 8, 32      # batch=2, seq=8, feature=32 (in_dim == out_dim in the module)
    CTX = 3                 # attention context window (integer, as passed to torch.triu)

    key = jax.random.PRNGKey(0)
    kq, kk, kv = jax.random.split(key, 3)
    q = jax.random.normal(kq, (B, T, D), jnp.float32)
    k = jax.random.normal(kk, (B, T, D), jnp.float32)
    v = jax.random.normal(kv, (B, T, D), jnp.float32)

    out = attention_forward(q, k, v, CTX)
    jax.block_until_ready(out)

    ref = reference(q, k, v, CTX)
    assert jnp.allclose(out, ref, atol=1e-4, rtol=1e-4), "attention output mismatch"
    print("KERNEL_OK")
</pallas_src>

<mosaic_0001>
module attributes {stable_mosaic.version = 11 : i64} {
  func.func @_attention_kernel(%arg0: i32, %arg1: memref<16x16xf32, #tpu.memory_space<vmem>>, %arg2: memref<16x32xf32, #tpu.memory_space<vmem>>, %arg3: memref<16x32xf32, #tpu.memory_space<vmem>>, %arg4: memref<16x32xf32, #tpu.memory_space<vmem>>, %arg5: memref<16x32xf32, #tpu.memory_space<vmem>>) attributes {dimension_semantics = [#tpu.dimension_semantics<parallel>], iteration_bounds = array<i64: 1>, scalar_prefetch = 0 : i64, scratch_operands = 0 : i64, tpu.core_type = #tpu.core_type<tc>, window_params = [{pipeline_mode = #tpu.pipeline_mode<synchronous>, transform_indices = @transform_0, window_bounds = array<i64: 16, 16>}, {pipeline_mode = #tpu.pipeline_mode<synchronous>, transform_indices = @transform_1, window_bounds = array<i64: 16, 32>}, {pipeline_mode = #tpu.pipeline_mode<synchronous>, transform_indices = @transform_2, window_bounds = array<i64: 16, 32>}, {pipeline_mode = #tpu.pipeline_mode<synchronous>, transform_indices = @transform_3, window_bounds = array<i64: 16, 32>}, {pipeline_mode = #tpu.pipeline_mode<synchronous>, transform_indices = @transform_4, window_bounds = array<i64: 16, 32>}]} {
    %c0 = arith.constant 0 : index
    %c0_0 = arith.constant 0 : index
    %0 = vector.load %arg3[%c0, %c0_0] : memref<16x32xf32, #tpu.memory_space<vmem>>, vector<16x32xf32>
    %cst = arith.constant 0.000000e+00 : f32
    %1 = vector.broadcast %cst : f32 to vector<16x32xf32>
    %2 = arith.maximumf %0, %1 : vector<16x32xf32>
    %c0_1 = arith.constant 0 : index
    %c0_2 = arith.constant 0 : index
    %3 = vector.load %arg4[%c0_1, %c0_2] : memref<16x32xf32, #tpu.memory_space<vmem>>, vector<16x32xf32>
    %4 = arith.mulf %2, %3 : vector<16x32xf32>
    %c0_3 = arith.constant 0 : index
    %c0_4 = arith.constant 0 : index
    %5 = vector.load %arg1[%c0_3, %c0_4] : memref<16x16xf32, #tpu.memory_space<vmem>>, vector<16x16xf32>
    %cst_5 = arith.constant dense<0.000000e+00> : vector<16x32xf32>
    %6 = tpu.matmul %5, %4, %cst_5 {dimension_numbers = #tpu.dot_dimension_numbers<[1], [0], [0], [1], [0, 0, 1, 1], [], []>} : vector<16x16xf32>, vector<16x32xf32>, vector<16x32xf32> -> vector<16x32xf32>
    %c0_6 = arith.constant 0 : index
    %c0_7 = arith.constant 0 : index
    %7 = vector.load %arg2[%c0_6, %c0_7] : memref<16x32xf32, #tpu.memory_space<vmem>>, vector<16x32xf32>
    %cst_8 = arith.constant 0.000000e+00 : f32
    %8 = vector.broadcast %cst_8 : f32 to vector<16x32xf32>
    %9 = arith.maximumf %7, %8 : vector<16x32xf32>
    %10 = arith.mulf %9, %6 : vector<16x32xf32>
    %c0_9 = arith.constant 0 : index
    %c0_10 = arith.constant 0 : index
    %11 = vector.load %arg5[%c0_9, %c0_10] : memref<16x32xf32, #tpu.memory_space<vmem>>, vector<16x32xf32>
    tpu.vector_store %arg5[%c0_9, %c0_10], %10 {strides = array<i32>} : memref<16x32xf32, #tpu.memory_space<vmem>>, vector<16x32xf32>,
    return
  }
  func.func @transform_0(%arg0: i32) -> (i32, i32) {
    %c0_i32 = arith.constant 0 : i32
    %c0_i32_0 = arith.constant 0 : i32
    %c0_i32_1 = arith.constant 0 : i32
    return %c0_i32, %c0_i32_0 : i32, i32
  }
  func.func @transform_1(%arg0: i32) -> (i32, i32) {
    %c0_i32 = arith.constant 0 : i32
    %c0_i32_0 = arith.constant 0 : i32
    %c0_i32_1 = arith.constant 0 : i32
    return %c0_i32, %c0_i32_0 : i32, i32
  }
  func.func @transform_2(%arg0: i32) -> (i32, i32) {
    %c0_i32 = arith.constant 0 : i32
    %c0_i32_0 = arith.constant 0 : i32
    %c0_i32_1 = arith.constant 0 : i32
    return %c0_i32, %c0_i32_0 : i32, i32
  }
  func.func @transform_3(%arg0: i32) -> (i32, i32) {
    %c0_i32 = arith.constant 0 : i32
    %c0_i32_0 = arith.constant 0 : i32
    %c0_i32_1 = arith.constant 0 : i32
    return %c0_i32, %c0_i32_0 : i32, i32
  }
  func.func @transform_4(%arg0: i32) -> (i32, i32) {
    %c0_i32 = arith.constant 0 : i32
    %c0_i32_0 = arith.constant 0 : i32
    %c0_i32_1 = arith.constant 0 : i32
    return %c0_i32, %c0_i32_0 : i32, i32
  }
}

</mosaic_0001>

<bundles_post_ra>
// kernel: tpu_custom_call.1
= control target key start
LH: loop header
LB: loop body
LE: loop exit
PB: predicated region body
PF: predicated region fallthrough
CT: control target
= control target key end

     0   :  { %9 = vsyncpa [#allocation3], 0  ;;  %s352_s0 = inlined_call_operand.hbm [shape: f32[16,16], index: 0, kind: input, shape index: {}]   ;;  %s353_s1 = inlined_call_operand.hbm [shape: f32[16,32], index: 1, kind: input, shape index: {}]   ;;  %s354_s2 = inlined_call_operand.hbm [shape: f32[16,32], index: 2, kind: input, shape index: {}]   ;;  %s355_s3 = inlined_call_operand.hbm [shape: f32[16,32], index: 3, kind: input, shape index: {}]   ;;  %s356_s4 = inlined_call_operand.hbm [shape: f32[16,32], index: 4, kind: output, shape index: {}]  }
   0x1   :  { %10 = vsyncpa [#allocation6], 0 }
   0x2   :  { %11 = vsyncpa [#allocation9], 0 }
   0x3   :  { %12 = vsyncpa [#allocation4], 0  ;;  %s30_s17 = sshll.u32 %s353_s1, 4  ;;  %s290_s18 = smov [#allocation5]   ;;  %s31_s17 = int_to_ptr.hbm [resolvable:$true] %s30_s17 }
   0x4   :  { %s32_s19 = sshll.u32 %s290_s18, 4  ;;  %s17_s22 = sshll.u32 %s352_s0, 4  ;;  %s33_s19 = int_to_ptr.vmem [resolvable:$true] %s32_s19  ;;  %s18_s22 = int_to_ptr.hbm [resolvable:$true] %s17_s22 }
   0x5   :  { %s291_s23 = smov 128   ;;  %s292_s24 = smov 8  }
   0x6   :  { %38 = dma.hbm_to_vmem [thread:$0]  %s31_s17, 256, %s33_s19, [#allocation6], %s291_s23, %s291_s23, %s292_s24  }
   0x7   :  { %s293_s25 = smov [#allocation2]   ;;  %s43_s1 = sshll.u32 %s354_s2, 4  ;;  %s44_s1 = int_to_ptr.hbm [resolvable:$true] %s43_s1 }
   0x8   :  { %s19_s26 = sshll.u32 %s293_s25, 4  ;;  %s56_s30 = sshll.u32 %s355_s3, 4  ;;  %s20_s26 = int_to_ptr.vmem [resolvable:$true] %s19_s26  ;;  %s57_s30 = int_to_ptr.hbm [resolvable:$true] %s56_s30 }
   0x9   :  { %25 = dma.hbm_to_vmem [thread:$0]  %s18_s22, 256, %s20_s26, [#allocation3], %s291_s23, %s291_s23, %s292_s24  }
   0xa   :  { %s294_s5 = smov [#allocation7]   ;;  %s295_s7 = smov [#allocation8]  }
   0xb   :  { %s45_s6 = sshll.u32 %s294_s5, 4  ;;  %s58_s2 = sshll.u32 %s295_s7, 4  ;;  %s46_s6 = int_to_ptr.vmem [resolvable:$true] %s45_s6  ;;  %s59_s2 = int_to_ptr.vmem [resolvable:$true] %s58_s2 }
   0xc   :  { %51 = dma.hbm_to_vmem [thread:$0]  %s44_s1, 256, %s46_s6, [#allocation6], %s291_s23, %s291_s23, %s292_s24  }
   0xd   :  { %64 = dma.hbm_to_vmem [thread:$0]  %s57_s30, 256, %s59_s2, [#allocation9], %s291_s23, %s291_s23, %s292_s24  }
   0xe   :  { %282 = dma.done.wait [#allocation3], 256  }
   0xf   :  { %283 = vsyncadd [#allocation3], 4294967040 }
  0x10   :  { %284 = dma.done.wait [#allocation6], 512  }
  0x11   :  { %285 = vsyncadd [#allocation6], 4294966784 }
  0x12   :  { %286 = dma.done.wait [#allocation9], 256  }
  0x13   :  { %287 = vsyncadd [#allocation9], 4294967040  ;;  %v82_v0 = vld [vmem:[#allocation7 + $0x8] sm:$0xff]  ;;  %v86_v1 = vld [vmem:[#allocation8 + $0x8] sm:$0xff]  ;;  %vm91_vm0 = vcmask 130048   ;;  %s296_s3 = smov [#allocation10]  }
  0x14   :  { %v81_v2 = vld [vmem:[#allocation7] sm:$0xff]  ;;  %v84_v3 = vmax.f32 %v82_v0, 0.0  ;;  %v85_v5 = vld [vmem:[#allocation8] sm:$0xff]  ;;  %v90_v9 = vld [vmem:[#allocation2 + $0x8] sm:$0xff]  ;;  %s134_s8 = sshll.u32 %s296_s3, 4  ;;  %s136_s11 = sshll.u32 %s356_s4, 4  ;;  %s135_s8 = int_to_ptr.vmem [resolvable:$true] %s134_s8  ;;  %s137_s11 = int_to_ptr.hbm [resolvable:$true] %s136_s11 }
  0x15   :  { %v83_v4 = vmax.f32 %v81_v2, 0.0  ;;  %v89_v8 = vld [vmem:[#allocation2] sm:$0xff]  ;;  %v121_v10 = vld [vmem:[#allocation5] sm:$0xff]  ;;  %v122_v11 = vld [vmem:[#allocation5 + $0x8] sm:$0xff]  ;;  %vm127_vm1 = vcmask 261120  }
  0x16   :  { %v88_v6 = vmul.f32 %v86_v1, %v84_v3  ;;  %v123_v12 = vmax.f32 %v121_v10, 0.0  ;;  %v124_v13 = vmax.f32 %v122_v11, 0.0 }
  0x17   :  { %v87_v7 = vmul.f32 %v85_v5, %v83_v4 }
  0x18   :  { %112 = vmatpush.msra.mxu0 %v88_v6  ;;  %153 = vmatpush.msra.mxu1 %v88_v6 }
  0x1a   :  { %113 = vmatpush.msra.mxu0 %v87_v7  ;;  %154 = vmatpush.msra.mxu1 %v87_v7 }
  0x1b   :  { %151 = vmatmul.msk.f32.vlgmr.msra.gmra.mxu0 %vm91_vm0, %v89_v8  ;;  %152 = vmatmul.msk.f32.vlgmr.msra.gmra.mxu1 %vm91_vm0, %v90_v9 }
  0x98   :  { %v115_v14 = vpop.f32.mrf.mxu0  ;;  %v118_v15 = vpop.f32.mrf.mxu1 }
  0x99   :  { %v125_v16 = vmul.f32 %v123_v12, %v115_v14  ;;  %v126_v17 = vmul.f32 %v124_v13, %v118_v15 }
  0x9b   :  { %128 = vst.msk [vmem:[#allocation10] sm:$0xff] %vm127_vm1, %v125_v16 }
  0x9c   :  { %129 = vst.msk [vmem:[#allocation10 + $0x8] sm:$0xff] %vm127_vm1, %v126_v17 }
  0x9d   :  { %142 = dma.vmem_to_hbm [thread:$0]  %s135_s8, 256, %s137_s11, [#allocation4], %s291_s23, %s291_s23, %s292_s24  }
  0x9e   :  { %288 = dma.done.wait [#allocation4], 256  }
  0x9f   :  { %289 = vsyncadd [#allocation4], 4294967040 }
  0xa0   :  { %147 = vsyncpa [#allocation3], 1 }
  0xa1   :  { %148 = vsyncpa [#allocation6], 1 }
  0xa2   :  { %149 = vsyncpa [#allocation9], 1 }
  0xa3   :  { %150 = vsyncpa [#allocation4], 1 }

</bundles_post_ra>
